<compile_context>
chip_gen: v7x
topology: tpu7x:2x2x1
jax: 0.10.0
libtpu: 0.0.40
codegen_flags: <defaults>
</compile_context>

<pallas_src>
import jax
import jax.numpy as jnp
from jax.experimental import pallas as pl
from jax.experimental.pallas import tpu as pltpu


def linear_resnet_kernel(z_ref, w13_ref, b1_ref, b23_ref, w2_ref, o_ref):
    H = b1_ref.shape[1]

    z = z_ref[...]                                    # [bb, D] f32
    zb = z.astype(jnp.bfloat16)                       # bf16 operand for the MXU

    # Fused first matmul: z @ [w1 | w3] -> [bb, H + D], accumulate in f32.
    zw = jnp.dot(zb, w13_ref[...], preferred_element_type=jnp.float32)

    pre_h = zw[:, :H] + b1_ref[...]                   # mlp pre-activation (f32)
    lin = zw[:, H:]                                   # linear branch (bias folded into b23)

    h = jnp.maximum(pre_h, 0.0)                       # ReLU, f32 on the VPU

    mlp = jnp.dot(h.astype(jnp.bfloat16), w2_ref[...],
                  preferred_element_type=jnp.float32)

    o_ref[...] = (mlp + b23_ref[...] + lin).astype(o_ref.dtype)


def linear_resnet(z, w13, b1, b23, w2, *, block_b=256):
    """z: [B, D] f32.  w13: [D, H+D] bf16 = [w1 | w3].  b1: [1, H] f32.
    b23: [1, D] f32 = b2 + b3.  w2: [H, D] bf16.  Returns [B, D] f32."""
    B, D = z.shape
    HpD = w13.shape[1]
    H = HpD - D
    assert w2.shape == (H, D)

    # Single block for small B (fastest, no per-step overhead); tile B when it
    # grows so z/out pipeline and the grid can shard across cores (v7x).
    bb = B if (B <= block_b or B % block_b != 0) else block_b
    grid = (B // bb,)

    return pl.pallas_call(
        linear_resnet_kernel,
        out_shape=jax.ShapeDtypeStruct((B, D), z.dtype),
        grid=grid,
        in_specs=[
            pl.BlockSpec((bb, D), lambda i: (i, 0)),      # z: tiled over batch
            pl.BlockSpec((D, HpD), lambda i: (0, 0)),     # w13: VMEM-resident
            pl.BlockSpec((1, H), lambda i: (0, 0)),       # b1
            pl.BlockSpec((1, D), lambda i: (0, 0)),       # b2 + b3
            pl.BlockSpec((H, D), lambda i: (0, 0)),       # w2
        ],
        out_specs=pl.BlockSpec((bb, D), lambda i: (i, 0)),
        compiler_params=pltpu.CompilerParams(
            dimension_semantics=("parallel",)),
    )(z, w13, b1, b23, w2)


if __name__ == "__main__":
    # Small shapes consistent with the module: feature dim D=128, mlp hidden
    # H=256; B=16 so the batch fills one (16,128) bf16 vreg tile.
    B, D, H = 16, 128, 256

    key = jax.random.PRNGKey(0)
    kz, k1, k2, k3, k4, k5, k6 = jax.random.split(key, 7)

    z = jax.random.normal(kz, (B, D), dtype=jnp.float32)

    # Parameters stored [in, out] (i.e. W.T of the torch Linear).
    w1 = jax.random.normal(k1, (D, H), dtype=jnp.float32) * 0.02
    b1 = jax.random.normal(k2, (1, H), dtype=jnp.float32) * 0.01
    w2 = jax.random.normal(k3, (H, D), dtype=jnp.float32) * 0.02
    b2 = jax.random.normal(k4, (1, D), dtype=jnp.float32) * 0.01
    w3 = jax.random.normal(k5, (D, D), dtype=jnp.float32) * 0.02
    b3 = jax.random.normal(k6, (1, D), dtype=jnp.float32) * 0.01

    # One-time wrapper-side fusion: w13 = [w1 | w3] (bf16), b23 = b2 + b3 (f32).
    w13 = jnp.concatenate([w1, w3], axis=1).astype(jnp.bfloat16)
    w2b = w2.astype(jnp.bfloat16)
    b23 = b2 + b3

    out = linear_resnet(z, w13, b1, b23, w2b)
    out = jax.block_until_ready(out)

    # Pure-JAX reference mirroring the kernel's bf16 operand quantization
    # (weights/activations rounded to bf16 at the dots, f32 accumulation).
    zq = z.astype(jnp.bfloat16).astype(jnp.float32)
    w1q = w1.astype(jnp.bfloat16).astype(jnp.float32)
    w2q = w2.astype(jnp.bfloat16).astype(jnp.float32)
    w3q = w3.astype(jnp.bfloat16).astype(jnp.float32)
    h_ref = jnp.maximum(zq @ w1q + b1, 0.0)
    hq = h_ref.astype(jnp.bfloat16).astype(jnp.float32)
    ref = (hq @ w2q + b2) + (zq @ w3q + b3)
    assert jnp.allclose(out, ref, atol=2e-2, rtol=2e-2), "mismatch vs reference"

    print("KERNEL_OK")
</pallas_src>

<mosaic_0001>
module attributes {stable_mosaic.version = 11 : i64} {
  func.func @linear_resnet_kernel(%arg0: i32, %arg1: memref<16x128xf32, #tpu.memory_space<vmem>>, %arg2: memref<128x384xbf16, #tpu.memory_space<vmem>>, %arg3: memref<1x256xf32, #tpu.memory_space<vmem>>, %arg4: memref<1x128xf32, #tpu.memory_space<vmem>>, %arg5: memref<256x128xbf16, #tpu.memory_space<vmem>>, %arg6: memref<16x128xf32, #tpu.memory_space<vmem>>) attributes {dimension_semantics = [#tpu.dimension_semantics<parallel>], iteration_bounds = array<i64: 1>, scalar_prefetch = 0 : i64, scratch_operands = 0 : i64, tpu.core_type = #tpu.core_type<tc>, window_params = [{transform_indices = @transform_0, window_bounds = array<i64: 16, 128>}, {pipeline_mode = #tpu.pipeline_mode<synchronous>, transform_indices = @transform_1, window_bounds = array<i64: 128, 384>}, {pipeline_mode = #tpu.pipeline_mode<synchronous>, transform_indices = @transform_2, window_bounds = array<i64: 1, 256>}, {pipeline_mode = #tpu.pipeline_mode<synchronous>, transform_indices = @transform_3, window_bounds = array<i64: 1, 128>}, {pipeline_mode = #tpu.pipeline_mode<synchronous>, transform_indices = @transform_4, window_bounds = array<i64: 256, 128>}, {transform_indices = @transform_5, window_bounds = array<i64: 16, 128>}]} {
    %c0 = arith.constant 0 : index
    %c0_0 = arith.constant 0 : index
    %0 = vector.load %arg1[%c0, %c0_0] : memref<16x128xf32, #tpu.memory_space<vmem>>, vector<16x128xf32>
    %1 = arith.truncf %0 : vector<16x128xf32> to vector<16x128xbf16>
    %c0_1 = arith.constant 0 : index
    %c0_2 = arith.constant 0 : index
    %2 = vector.load %arg2[%c0_1, %c0_2] : memref<128x384xbf16, #tpu.memory_space<vmem>>, vector<128x384xbf16>
    %cst = arith.constant dense<0.000000e+00> : vector<16x384xf32>
    %3 = tpu.matmul %1, %2, %cst {dimension_numbers = #tpu.dot_dimension_numbers<[1], [0], [0], [1], [0, 0, 1, 1], [], []>} : vector<16x128xbf16>, vector<128x384xbf16>, vector<16x384xf32> -> vector<16x384xf32>
    %4 = vector.extract_strided_slice %3 {offsets = [0, 0], sizes = [16, 256], strides = [1, 1]} : vector<16x384xf32> to vector<16x256xf32>
    %c0_3 = arith.constant 0 : index
    %c0_4 = arith.constant 0 : index
    %5 = vector.load %arg3[%c0_3, %c0_4] : memref<1x256xf32, #tpu.memory_space<vmem>>, vector<1x256xf32>
    %6 = vector.broadcast %5 : vector<1x256xf32> to vector<16x256xf32>
    %7 = arith.addf %4, %6 : vector<16x256xf32>
    %8 = vector.extract_strided_slice %3 {offsets = [0, 256], sizes = [16, 128], strides = [1, 1]} : vector<16x384xf32> to vector<16x128xf32>
    %cst_5 = arith.constant 0.000000e+00 : f32
    %9 = vector.broadcast %cst_5 : f32 to vector<16x256xf32>
    %10 = arith.maximumf %7, %9 : vector<16x256xf32>
    %11 = arith.truncf %10 : vector<16x256xf32> to vector<16x256xbf16>
    %c0_6 = arith.constant 0 : index
    %c0_7 = arith.constant 0 : index
    %12 = vector.load %arg5[%c0_6, %c0_7] : memref<256x128xbf16, #tpu.memory_space<vmem>>, vector<256x128xbf16>
    %cst_8 = arith.constant dense<0.000000e+00> : vector<16x128xf32>
    %13 = tpu.matmul %11, %12, %cst_8 {dimension_numbers = #tpu.dot_dimension_numbers<[1], [0], [0], [1], [0, 0, 1, 1], [], []>} : vector<16x256xbf16>, vector<256x128xbf16>, vector<16x128xf32> -> vector<16x128xf32>
    %c0_9 = arith.constant 0 : index
    %c0_10 = arith.constant 0 : index
    %14 = vector.load %arg4[%c0_9, %c0_10] : memref<1x128xf32, #tpu.memory_space<vmem>>, vector<1x128xf32>
    %15 = vector.broadcast %14 : vector<1x128xf32> to vector<16x128xf32>
    %16 = arith.addf %13, %15 : vector<16x128xf32>
    %17 = arith.addf %16, %8 : vector<16x128xf32>
    %c0_11 = arith.constant 0 : index
    %c0_12 = arith.constant 0 : index
    %18 = vector.load %arg6[%c0_11, %c0_12] : memref<16x128xf32, #tpu.memory_space<vmem>>, vector<16x128xf32>
    tpu.vector_store %arg6[%c0_11, %c0_12], %17 {strides = array<i32>} : memref<16x128xf32, #tpu.memory_space<vmem>>, vector<16x128xf32>,
    return
  }
  func.func @transform_0(%arg0: i32) -> (i32, i32) {
    %c0_i32 = arith.constant 0 : i32
    %c0_i32_0 = arith.constant 0 : i32
    return %arg0, %c0_i32 : i32, i32
  }
  func.func @transform_1(%arg0: i32) -> (i32, i32) {
    %c0_i32 = arith.constant 0 : i32
    %c0_i32_0 = arith.constant 0 : i32
    %c0_i32_1 = arith.constant 0 : i32
    return %c0_i32, %c0_i32_0 : i32, i32
  }
  func.func @transform_2(%arg0: i32) -> (i32, i32) {
    %c0_i32 = arith.constant 0 : i32
    %c0_i32_0 = arith.constant 0 : i32
    %c0_i32_1 = arith.constant 0 : i32
    return %c0_i32, %c0_i32_0 : i32, i32
  }
  func.func @transform_3(%arg0: i32) -> (i32, i32) {
    %c0_i32 = arith.constant 0 : i32
    %c0_i32_0 = arith.constant 0 : i32
    %c0_i32_1 = arith.constant 0 : i32
    return %c0_i32, %c0_i32_0 : i32, i32
  }
  func.func @transform_4(%arg0: i32) -> (i32, i32) {
    %c0_i32 = arith.constant 0 : i32
    %c0_i32_0 = arith.constant 0 : i32
    %c0_i32_1 = arith.constant 0 : i32
    return %c0_i32, %c0_i32_0 : i32, i32
  }
  func.func @transform_5(%arg0: i32) -> (i32, i32) {
    %c0_i32 = arith.constant 0 : i32
    %c0_i32_0 = arith.constant 0 : i32
    return %arg0, %c0_i32 : i32, i32
  }
}

</mosaic_0001>

<bundles_post_ra>
// kernel: tpu_custom_call.1
= control target key start
LH: loop header
LB: loop body
LE: loop exit
PB: predicated region body
PF: predicated region fallthrough
CT: control target
= control target key end

     0   :  { %10 = vsyncpa [#allocation3], 0  ;;  %s889_s0 = inlined_call_operand.hbm [shape: f32[16,128], index: 0, kind: input, shape index: {}]   ;;  %s890_s1 = inlined_call_operand.hbm [shape: bf16[128,384], index: 1, kind: input, shape index: {}]   ;;  %s891_s2 = inlined_call_operand.vmem [shape: f32[1,256], index: 2, kind: input, shape index: {}]   ;;  %s892_s3 = inlined_call_operand.vmem [shape: f32[1,128], index: 3, kind: input, shape index: {}]   ;;  %s893_s4 = inlined_call_operand.hbm [shape: bf16[256,128], index: 4, kind: input, shape index: {}]   ;;  %s894_s5 = inlined_call_operand.hbm [shape: f32[16,128], index: 5, kind: output, shape index: {}]  }
   0x1   :  { %11 = vsyncpa [#allocation6], 0 }
   0x2   :  { %12 = vsyncpa [#allocation4], 0  ;;  %s777_s18 = smov [#allocation5]   ;;  %s683_s22 = scalar_lea.hbm %s890_s1, 3072 }
   0x3   :  { %s30_s19 = sshll.u32 %s777_s18, 4  ;;  %p684_p0 = scmp.ne.s32.totalorder %s890_s1, %s683_s22  ;;  %s31_s19 = int_to_ptr.vmem [resolvable:$true] %s30_s19 }
   0x4   :  { %p687_p1 = scmp.lt.u32.totalorder %s683_s22, %s890_s1 }
   0x6   :  { %p689_p2 = pnand %p687_p1, %p684_p0 }
   0x8   :  { %692 = shalt.err (!%p689_p2)
}
   0x9   :  { %s693_s27 = scalar_lea.vmem %s31_s19, 3072  ;;  %p698_p4 = scmp.lt.s32.totalorder %s31_s19, %s31_s19 }
   0xa   :  { %p694_p3 = scmp.ne.s32.totalorder %s31_s19, %s693_s27  ;;  %p699_p5 = scmp.lt.s32.totalorder %s693_s27, %s693_s27 }
   0xc   :  { %p700_p6 = por %p699_p5, %p698_p4 }
   0xe   :  { %p701_p7 = pnand %p700_p6, %p694_p3 }
  0x10   :  { %704 = shalt.err (!%p701_p7)
}
  0x11   :  { %s778_s28 = smov 192   ;;  %s779_s29 = smov 12  }
  0x12   :  { %36 = dma.hbm_to_vmem [thread:$0]  %s890_s1, 3072, %s31_s19, [#allocation6], %s778_s28, %s778_s28, %s779_s29  }
  0x13   :  { %s780_s7 = smov [#allocation2]   ;;  %s705_s11 = scalar_lea.hbm %s889_s0, 256 }
  0x14   :  { %s18_s8 = sshll.u32 %s780_s7, 4  ;;  %p706_p8 = scmp.ne.s32.totalorder %s889_s0, %s705_s11  ;;  %s19_s8 = int_to_ptr.vmem [resolvable:$true] %s18_s8 }
  0x15   :  { %p709_p9 = scmp.lt.u32.totalorder %s705_s11, %s889_s0 }
  0x17   :  { %p711_p10 = pnand %p709_p9, %p706_p8 }
  0x19   :  { %714 = shalt.err (!%p711_p10)
}
  0x1a   :  { %s715_s16 = scalar_lea.vmem %s19_s8, 256  ;;  %p720_p12 = scmp.lt.s32.totalorder %s19_s8, %s19_s8 }
  0x1b   :  { %p716_p11 = scmp.ne.s32.totalorder %s19_s8, %s715_s16  ;;  %p721_p13 = scmp.lt.s32.totalorder %s715_s16, %s715_s16 }
  0x1d   :  { %p722_p0 = por %p721_p13, %p720_p12 }
  0x1f   :  { %p723_p1 = pnand %p722_p0, %p716_p11 }
  0x21   :  { %726 = shalt.err (!%p723_p1)
}
  0x22   :  { %s781_s1 = smov 128   ;;  %s782_s17 = smov 8  }
  0x23   :  { %24 = dma.hbm_to_vmem [thread:$0]  %s889_s0, 256, %s19_s8, [#allocation3], %s781_s1, %s781_s1, %s782_s17  }
  0x24   :  { %s783_s20 = smov [#allocation7]   ;;  %s727_s24 = scalar_lea.hbm %s893_s4, 2048 }
  0x25   :  { %s46_s21 = sshll.u32 %s783_s20, 4  ;;  %p728_p2 = scmp.ne.s32.totalorder %s893_s4, %s727_s24  ;;  %s47_s21 = int_to_ptr.vmem [resolvable:$true] %s46_s21 }
  0x26   :  { %p731_p3 = scmp.lt.u32.totalorder %s727_s24, %s893_s4 }
  0x28   :  { %p733_p4 = pnand %p731_p3, %p728_p2 }
  0x2a   :  { %736 = shalt.err (!%p733_p4)
}
  0x2b   :  { %s737_s29 = scalar_lea.vmem %s47_s21, 2048  ;;  %p742_p6 = scmp.lt.s32.totalorder %s47_s21, %s47_s21 }
  0x2c   :  { %p738_p5 = scmp.ne.s32.totalorder %s47_s21, %s737_s29  ;;  %p743_p7 = scmp.lt.s32.totalorder %s737_s29, %s737_s29 }
  0x2e   :  { %p744_p8 = por %p743_p7, %p742_p6 }
  0x30   :  { %p745_p9 = pnand %p744_p8, %p738_p5 }
  0x32   :  { %748 = shalt.err (!%p745_p9)
}
  0x33   :  { %s784_s0 = smov 64   ;;  %s785_s30 = smov 4  }
  0x34   :  { %52 = dma.hbm_to_vmem [thread:$0]  %s893_s4, 2048, %s47_s21, [#allocation6], %s784_s0, %s784_s0, %s785_s30  }
  0x35   :  { %771 = dma.done.wait [#allocation3], 256  }
  0x36   :  { %772 = vsyncadd [#allocation3], 4294967040 }
  0x37   :  { %773 = dma.done.wait [#allocation6], 5120  }
  0x38   :  { %774 = vsyncadd [#allocation6], 4294962176  ;;  %v786_v0 = vmov 0   ;;  %v787_v1 = vmov 0.0   ;;  %v635_v2 = vld [vmem:[#allocation5 + $0x4] ss:$12 sps:$4 sm:$0xff]   ;;  %v312_v45 = vlaneseq }
  0x39   :  { %258 = vmatprep.mubr.bf16.mxu0 %v786_v0  ;;  %602 = vmatprep.subr.bf16.mxu1 %v787_v1  ;;  %v637_v3 = vld [vmem:[#allocation5] ss:$12 sps:$4 sm:$0xff]   ;;  %v638_v4 = vld [vmem:[#allocation5 + $0x1c] ss:$12 sps:$4 sm:$0xff]   ;;  %v640_v5 = vld [vmem:[#allocation5 + $0x18] ss:$12 sps:$4 sm:$0xff]  }
  0x3a   :  { %226 = vmatprep.subr.bf16.mxu0 %v635_v2  ;;  %v641_v6 = vld [vmem:[#allocation5 + $0x34] ss:$12 sps:$4 sm:$0xff]   ;;  %v643_v7 = vld [vmem:[#allocation5 + $0x30] ss:$12 sps:$4 sm:$0xff]   ;;  %v644_v8 = vld [vmem:[#allocation5 + $0x4c] ss:$12 sps:$4 sm:$0xff]  }
  0x3b   :  { %227 = vmatpush1.bf16.msra.mxu0 %v637_v3  ;;  %v646_v9 = vld [vmem:[#allocation5 + $0x48] ss:$12 sps:$4 sm:$0xff]   ;;  %v647_v10 = vld [vmem:[#allocation5 + $0x64] ss:$12 sps:$4 sm:$0xff]   ;;  %v649_v12 = vld [vmem:[#allocation5 + $0x60] ss:$12 sps:$4 sm:$0xff]  }
  0x3c   :  { %228 = vmatprep.subr.bf16.mxu0 %v638_v4  ;;  %v661_v11 = vld [vmem:[#allocation5 + $0x8] ss:$12 sps:$4 sm:$0xff]   ;;  %v664_v14 = vld [vmem:[#allocation5 + $0x20] ss:$12 sps:$4 sm:$0xff]   ;;  %v652_v15 = vld [vmem:[#allocation5 + $0x78] ss:$12 sps:$4 sm:$0xff]  }
  0x3d   :  { %v650_v13 = vld [vmem:[#allocation5 + $0x7c] ss:$12 sps:$4 sm:$0xff]   ;;  %603 = vmatpush3.bf16.msra.mxu1 %v661_v11  ;;  %v653_v16 = vld [vmem:[#allocation5 + $0x94] ss:$12 sps:$4 sm:$0xff]   ;;  %v667_v17 = vld [vmem:[#allocation5 + $0x38] ss:$12 sps:$4 sm:$0xff]  }
  0x3e   :  { %604 = vmatprep.subr.bf16.mxu1 %v787_v1  ;;  %v655_v18 = vld [vmem:[#allocation5 + $0x90] ss:$12 sps:$4 sm:$0xff]   ;;  %v656_v19 = vld [vmem:[#allocation5 + $0xac] ss:$12 sps:$4 sm:$0xff]   ;;  %v658_v21 = vld [vmem:[#allocation5 + $0xa8] ss:$12 sps:$4 sm:$0xff]  }
  0x3f   :  { %229 = vmatpush1.bf16.msra.mxu0 %v640_v5  ;;  %v670_v20 = vld [vmem:[#allocation5 + $0x50] ss:$12 sps:$4 sm:$0xff]   ;;  %v659_v24 = vld [vmem:[#allocation7 + $0x40] sm:$0xff]   ;;  %v673_v25 = vld [vmem:[#allocation5 + $0x68] ss:$12 sps:$4 sm:$0xff]   ;;  %vm788_vm0 = vmmov 0  }
  0x40   :  { %230 = vmatprep.subr.bf16.mxu0 %v641_v6  ;;  %v63_v22 = vld [vmem:[#allocation2] sm:$0xff]  ;;  %v64_v23 = vld [vmem:[#allocation2 + $0x8] sm:$0xff]  ;;  %v660_v26 = vld [vmem:[#allocation7] sm:$0xff]   ;;  %618 = vmatprep.mubr.msk.bf16.mxu1 %vm788_vm0, %v787_v1  ;;  %v313_v46 = vshrl.u32 %v312_v45, 7  ;;  %s789_s10 = smov [#allocation8]  }
  0x41   :  { %605 = vmatpush3.bf16.msra.mxu1 %v664_v14  ;;  %v65_v27 = vpack.c.bf16 %v64_v23, %v63_v22  ;;  %v662_v28 = vld [vmem:[#allocation7 + $0x48] sm:$0xff]   ;;  %v665_v30 = vld [vmem:[#allocation7 + $0x50] sm:$0xff]   ;;  %v668_v32 = vld [vmem:[#allocation7 + $0x58] sm:$0xff]   ;;  %s517_s11 = sshll.u32 %s789_s10, 4  ;;  %s518_s11 = int_to_ptr.vmem [resolvable:$true] %s517_s11 }
  0x42   :  { %606 = vmatprep.subr.bf16.mxu1 %v787_v1  ;;  %v663_v29 = vld [vmem:[#allocation7 + $0x8] sm:$0xff]   ;;  %v666_v31 = vld [vmem:[#allocation7 + $0x10] sm:$0xff]   ;;  %v669_v33 = vld [vmem:[#allocation7 + $0x18] sm:$0xff]   ;;  %v314_v47 = vsub.s32 0, %v313_v46  ;;  %v318_v49 = vsub.s32 1, %v313_v46  ;;  %s749_s12 = scalar_lea.vmem %s518_s11, 256  ;;  %p754_p11 = scmp.lt.s32.totalorder %s518_s11, %s518_s11 }
  0x43   :  { %231 = vmatpush1.bf16.msra.mxu0 %v643_v7  ;;  %v671_v34 = vld [vmem:[#allocation7 + $0x60] sm:$0xff]   ;;  %v674_v36 = vld [vmem:[#allocation7 + $0x68] sm:$0xff]   ;;  %v677_v39 = vld [vmem:[#allocation7 + $0x70] sm:$0xff]   ;;  %p750_p10 = scmp.ne.s32.totalorder %s518_s11, %s749_s12  ;;  %p755_p12 = scmp.lt.s32.totalorder %s749_s12, %s749_s12 }
  0x44   :  { %232 = vmatprep.subr.bf16.mxu0 %v644_v8  ;;  %v672_v35 = vld [vmem:[#allocation7 + $0x20] sm:$0xff]   ;;  %v675_v37 = vld [vmem:[#allocation7 + $0x28] sm:$0xff]   ;;  %v678_v40 = vld [vmem:[#allocation7 + $0x30] sm:$0xff]  }
  0x45   :  { %607 = vmatpush3.bf16.msra.mxu1 %v667_v17  ;;  %v676_v38 = vld [vmem:[#allocation5 + $0x80] ss:$12 sps:$4 sm:$0xff]   ;;  %v679_v41 = vld [vmem:[#allocation5 + $0x98] ss:$12 sps:$4 sm:$0xff]   ;;  %v682_v44 = vld [vmem:[#allocation5 + $0xb0] ss:$12 sps:$4 sm:$0xff]   ;;  %p756_p13 = por %p755_p12, %p754_p11 }
  0x46   :  { %608 = vmatprep.subr.bf16.mxu1 %v787_v1  ;;  %v680_v42 = vld [vmem:[#allocation7 + $0x78] sm:$0xff]   ;;  %v310_v48 = vld [vmem:[%s891_s2] sm:$0x3] }
  0x47   :  { %233 = vmatpush1.bf16.msra.mxu0 %v646_v9  ;;  %v681_v43 = vld [vmem:[#allocation7 + $0x38] sm:$0xff]   ;;  %v315_v50 = vrot.slane %v310_v48, %v314_v47  ;;  %v319_v51 = vrot.slane %v310_v48, %v318_v49  ;;  %v554_v8 = vld [vmem:[%s892_s3] ss:$0 sm:$0xff]  ;;  %p757_p0 = pnand %p756_p13, %p750_p10 }
  0x48   :  { %234 = vmatprep.subr.bf16.mxu0 %v647_v10 }
  0x49   :  { %609 = vmatpush3.bf16.msra.mxu1 %v670_v20 }
  0x4a   :  { %610 = vmatprep.subr.bf16.mxu1 %v787_v1 }
  0x4b   :  { %235 = vmatpush1.bf16.msra.mxu0 %v649_v12 }
  0x4c   :  { %236 = vmatprep.subr.bf16.mxu0 %v650_v13 }
  0x4d   :  { %611 = vmatpush3.bf16.msra.mxu1 %v673_v25 }
  0x4e   :  { %612 = vmatprep.subr.bf16.mxu1 %v787_v1 }
  0x4f   :  { %237 = vmatpush1.bf16.msra.mxu0 %v652_v15 }
  0x50   :  { %238 = vmatprep.subr.bf16.mxu0 %v653_v16 }
  0x51   :  { %613 = vmatpush3.bf16.msra.mxu1 %v676_v38 }
  0x52   :  { %614 = vmatprep.subr.bf16.mxu1 %v787_v1 }
  0x53   :  { %239 = vmatpush1.bf16.msra.mxu0 %v655_v18 }
  0x54   :  { %240 = vmatprep.subr.bf16.mxu0 %v656_v19 }
  0x55   :  { %615 = vmatpush3.bf16.msra.mxu1 %v679_v41 }
  0x56   :  { %616 = vmatprep.subr.bf16.mxu1 %v787_v1 }
  0x57   :  { %241 = vmatpush1.bf16.msra.mxu0 %v658_v21 }
  0x58   :  { %580 = vmatprep.subr.bf16.mxu0 %v659_v24 }
  0x59   :  { %617 = vmatpush3.bf16.msra.mxu1 %v682_v44 }
  0x5a   :  { %259 = vmatmul.mubr.bf16.vlgmr.msra.gmra.mrb[0].mxu0 %v65_v27 }
  0x5b   :  { %581 = vmatpush3.bf16.msra.mxu0 %v660_v26 }
  0x5c   :  { %582 = vmatprep.subr.bf16.mxu0 %v662_v28  ;;  %619 = vmatmul.mubr.bf16.vlgmr.msra.gmra.mrb[0].mxu1 %v65_v27 }
  0x5f   :  { %583 = vmatpush3.bf16.msra.mxu0 %v663_v29 }
  0x60   :  { %584 = vmatprep.subr.bf16.mxu0 %v665_v30 }
  0x63   :  { %585 = vmatpush3.bf16.msra.mxu0 %v666_v31 }
  0x64   :  { %586 = vmatprep.subr.bf16.mxu0 %v668_v32 }
  0x67   :  { %587 = vmatpush3.bf16.msra.mxu0 %v669_v33 }
  0x68   :  { %588 = vmatprep.subr.bf16.mxu0 %v671_v34 }
  0x6b   :  { %589 = vmatpush3.bf16.msra.mxu0 %v672_v35 }
  0x6c   :  { %590 = vmatprep.subr.bf16.mxu0 %v674_v36 }
  0x6f   :  { %591 = vmatpush3.bf16.msra.mxu0 %v675_v37 }
  0x70   :  { %592 = vmatprep.subr.bf16.mxu0 %v677_v39 }
  0x73   :  { %593 = vmatpush3.bf16.msra.mxu0 %v678_v40 }
  0x74   :  { %594 = vmatprep.subr.bf16.mxu0 %v680_v42 }
  0x77   :  { %595 = vmatpush3.bf16.msra.mxu0 %v681_v43 }
 0x12d   :  { %v260_v52 = vpop.f32.mrb[0].mxu0 }
 0x12e   :  { %v322_v53 = vadd.f32 %v315_v50, %v260_v52  ;;  %v262_v54 = vpop.f32.mrb[1].mxu0 }
 0x12f   :  { %v323_v55 = vadd.f32 %v319_v51, %v262_v54  ;;  %v264_v56 = vpop.f32.mrb[2].mxu0  ;;  %v303_v2 = vpop.f32.mrb[0].mxu1 }
 0x130   :  { %v324_v57 = vadd.f32 %v315_v50, %v264_v56  ;;  %v266_v58 = vpop.f32.mrb[3].mxu0  ;;  %v326_v60 = vmax.f32 %v322_v53, 0.0  ;;  %v620_v3 = vpop.f32.mrb[1].mxu1 }
 0x131   :  { %v325_v59 = vadd.f32 %v319_v51, %v266_v58  ;;  %v327_v62 = vmax.f32 %v323_v55, 0.0  ;;  %v306_v4 = vpop.f32.mrb[2].mxu1 }
 0x132   :  { %v328_v61 = vmax.f32 %v324_v57, 0.0  ;;  %v621_v5 = vpop.f32.mrb[3].mxu1 }
 0x133   :  { %v329_v63 = vmax.f32 %v325_v59, 0.0 }
 0x134   :  { %v330_v0 = vpack.c.bf16 %v328_v61, %v326_v60 }
 0x135   :  { %v331_v1 = vpack.c.bf16 %v329_v63, %v327_v62 }
 0x137   :  { %499 = vmatprep.mubr.bf16.mxu0 %v331_v1 }
 0x138   :  { %500 = vmatmul.mubr.bf16.vlgmr.msra.gmra.mrb[4].mxu0 %v330_v0 }
 0x20b   :  { %v596_v6 = vpop.f32.mrb[4].mxu0 }
 0x20c   :  { %v597_v7 = vpop.f32.mrb[5].mxu0 }
 0x20d   :  { %v598_v9 = vadd.f32 %v597_v7, %v596_v6  ;;  %v599_v10 = vpop.f32.mrb[6].mxu0 }
 0x20e   :  { %v600_v11 = vpop.f32.mrb[7].mxu0 }
 0x20f   :  { %v502_v12 = vadd.f32 %v598_v9, %v554_v8  ;;  %v601_v13 = vadd.f32 %v600_v11, %v599_v10 }
 0x211   :  { %v508_v14 = vadd.f32 %v502_v12, %v303_v2  ;;  %v505_v15 = vadd.f32 %v601_v13, %v554_v8 }
 0x213   :  { %510 = vst [vmem:[#allocation8] sm:$0xff] %v508_v14  ;;  %v509_v16 = vadd.f32 %v505_v15, %v306_v4 }
 0x215   :  { %511 = vst [vmem:[#allocation8 + $0x8] sm:$0xff] %v509_v16 }
 0x216   :  { %760 = shalt.err (!%p757_p0)
}
 0x217   :  { %s761_s14 = scalar_lea.hbm %s894_s5, 256 }
 0x218   :  { %p762_p1 = scmp.ne.s32.totalorder %s894_s5, %s761_s14  ;;  %p765_p2 = scmp.lt.u32.totalorder %s761_s14, %s894_s5 }
 0x21a   :  { %p767_p3 = pnand %p765_p2, %p762_p1 }
 0x21c   :  { %770 = shalt.err (!%p767_p3)
}
 0x21d   :  { %523 = dma.vmem_to_hbm [thread:$0]  %s518_s11, 256, %s894_s5, [#allocation4], %s781_s1, %s781_s1, %s782_s17  }
 0x21e   :  { %775 = dma.done.wait [#allocation4], 256  }
 0x21f   :  { %776 = vsyncadd [#allocation4], 4294967040 }
 0x220   :  { %527 = vsyncpa [#allocation3], 1 }
 0x221   :  { %528 = vsyncpa [#allocation6], 1 }
 0x222   :  { %529 = vsyncpa [#allocation4], 1 }

</bundles_post_ra>
